<compile_context>
chip_gen: v6e
topology: v6e:2x2x1
jax: 0.10.0
libtpu: 0.0.40
codegen_flags: <defaults>
</compile_context>

<pallas_src>
import functools

import jax
import jax.numpy as jnp
from jax.experimental import pallas as pl
from jax.experimental.pallas import tpu as pltpu


def _round_up(n, m):
    return ((n + m - 1) // m) * m


def _ffn_kernel(x_ref, w1_ref, b1_ref, w2_ref, b2_ref, o_ref, acc_ref):
    # x_ref:  (tm, Ep)  bf16   row tile of the (padded) input
    # w1_ref: (Ep, th)  bf16   fc1 weight slab (already transposed vs torch)
    # b1_ref: (1,  th)  f32    fc1 bias slab
    # w2_ref: (th, Ep)  bf16   fc2 weight slab (already transposed vs torch)
    # b2_ref: (1,  Ep)  f32    fc2 bias (constant across the grid)
    # o_ref:  (tm, Ep)         output row tile (written on the last H step)
    # acc_ref:(tm, Ep)  f32    accumulator across H slabs
    h_idx = pl.program_id(1)
    n_h = pl.num_programs(1)

    # fc1 slab + bias + ReLU (f32 accumulate on the MXU).
    h = jnp.dot(x_ref[...], w1_ref[...], preferred_element_type=jnp.float32)
    h = jnp.maximum(h + b1_ref[...], 0.0)

    # Partial fc2 contribution of this hidden slab (bf16 in, f32 accumulate).
    partial = jnp.dot(h.astype(w2_ref.dtype), w2_ref[...],
                      preferred_element_type=jnp.float32)

    @pl.when(h_idx == 0)
    def _():
        acc_ref[...] = partial

    @pl.when(h_idx != 0)
    def _():
        acc_ref[...] += partial

    @pl.when(h_idx == n_h - 1)
    def _():
        o_ref[...] = (acc_ref[...] + b2_ref[...]).astype(o_ref.dtype)


@functools.partial(jax.jit, static_argnames=("block_rows", "block_hidden"))
def feed_forward(x, w1, b1, w2, b2, *, block_rows=256, block_hidden=512):
    """x: (..., E).  w1: (E, H), b1: (H,), w2: (H, E), b2: (E,).  Returns (..., E)."""
    orig_shape = x.shape
    out_dtype = x.dtype
    E = orig_shape[-1]
    H = w1.shape[1]

    x2d = x.reshape(-1, E)
    M = x2d.shape[0]

    # --- Padded geometry ------------------------------------------------
    # Lane-dense embed dim (output last dim a multiple of 128 -> unmasked vst).
    E_pad = _round_up(E, 128)
    # Hidden tile: multiple of 128, capped by block_hidden; H padded to it.
    th = min(_round_up(max(block_hidden, 128), 128), _round_up(H, 128))
    H_pad = _round_up(H, th)
    # Row tile: large & MXU friendly, multiple of 16 (bf16 sublane packing),
    # shrunk for tiny inputs so padding stays negligible.
    tm = min(_round_up(max(block_rows, 16), 16), _round_up(M, 16))
    M_pad = _round_up(M, tm)

    # --- Zero-pad operands (exact for Linear->ReLU->Linear) --------------
    if M_pad != M or E_pad != E:
        x2d = jnp.pad(x2d, ((0, M_pad - M), (0, E_pad - E)))
    w1_p = jnp.pad(w1, ((0, E_pad - E), (0, H_pad - H)))
    b1_p = jnp.pad(b1, (0, H_pad - H))
    w2_p = jnp.pad(w2, ((0, H_pad - H), (0, E_pad - E)))
    b2_p = jnp.pad(b2, (0, E_pad - E))

    # bf16 operands for the MXU, f32 biases / accumulation.
    x_bf = x2d.astype(jnp.bfloat16)
    w1_bf = w1_p.astype(jnp.bfloat16)
    w2_bf = w2_p.astype(jnp.bfloat16)
    b1_2d = b1_p.reshape(1, H_pad).astype(jnp.float32)
    b2_2d = b2_p.reshape(1, E_pad).astype(jnp.float32)

    grid = (M_pad // tm, H_pad // th)

    # Explicit scoped-VMEM budget: double-buffered x/out/w1/w2/b1 tiles,
    # single-buffered b2, accumulator + fc1 activation temp, 2x headroom.
    vmem_need = (
        2 * tm * E_pad * 2        # x tiles (bf16)
        + 2 * tm * E_pad * 4      # out tiles (up to f32)
        + 2 * E_pad * th * 2      # w1 slabs (bf16)
        + 2 * th * E_pad * 2      # w2 slabs (bf16)
        + 2 * th * 4              # b1 slabs
        + E_pad * 4               # b2 (single buffer)
        + tm * E_pad * 4          # accumulator scratch
        + tm * th * 4             # fc1 activation temporary
    )
    vmem_limit = int(min(max(2 * vmem_need, 16 * 1024 * 1024),
                         64 * 1024 * 1024))

    cost = pl.CostEstimate(
        flops=4 * M_pad * E_pad * H_pad,       # two matmuls: 2*M*E*H each
        transcendentals=0,
        bytes_accessed=(M_pad * E_pad * 2 + E_pad * H_pad * 2
                        + H_pad * E_pad * 2 + H_pad * 4 + E_pad * 4
                        + M_pad * E_pad * 4),
    )

    out = pl.pallas_call(
        _ffn_kernel,
        out_shape=jax.ShapeDtypeStruct((M_pad, E_pad), out_dtype),
        grid_spec=pltpu.PrefetchScalarGridSpec(
            num_scalar_prefetch=0,
            grid=grid,
            in_specs=[
                pl.BlockSpec((tm, E_pad), lambda i, h: (i, 0)),   # x row tile
                pl.BlockSpec((E_pad, th), lambda i, h: (0, h)),   # w1 slab
                pl.BlockSpec((1, th), lambda i, h: (0, h)),       # b1 slab
                pl.BlockSpec((th, E_pad), lambda i, h: (h, 0)),   # w2 slab
                pl.BlockSpec((1, E_pad), lambda i, h: (0, 0),     # b2 (const)
                             pipeline_mode=pl.Buffered(1)),
            ],
            out_specs=pl.BlockSpec((tm, E_pad), lambda i, h: (i, 0)),
            scratch_shapes=[pltpu.VMEM((tm, E_pad), jnp.float32)],
        ),
        compiler_params=pltpu.CompilerParams(
            dimension_semantics=("parallel", "arbitrary"),
            vmem_limit_bytes=vmem_limit,
        ),
        cost_estimate=cost,
    )(x_bf, w1_bf, b1_2d, w2_bf, b2_2d)

    if M_pad != M or E_pad != E:
        out = out[:M, :E]
    return out.reshape(orig_shape)


def init_params(key, embed_size, forward_expansion):
    """Deterministic init mimicking nn.Linear's uniform(-1/sqrt(fan_in), ...)."""
    hidden = forward_expansion * embed_size
    k1, k2, k3, k4 = jax.random.split(key, 4)
    bound1 = 1.0 / jnp.sqrt(embed_size)
    bound2 = 1.0 / jnp.sqrt(hidden)
    # Stored already transposed vs. torch: w1 (E, H), w2 (H, E).
    w1 = jax.random.uniform(k1, (embed_size, hidden), jnp.float32, -bound1, bound1)
    b1 = jax.random.uniform(k2, (hidden,), jnp.float32, -bound1, bound1)
    w2 = jax.random.uniform(k3, (hidden, embed_size), jnp.float32, -bound2, bound2)
    b2 = jax.random.uniform(k4, (embed_size,), jnp.float32, -bound2, bound2)
    return w1, b1, w2, b2


if __name__ == "__main__":
    # Small shapes consistent with the module's forward: (batch, seq, embed).
    batch, seq, embed_size, forward_expansion = 2, 8, 32, 4

    key = jax.random.PRNGKey(0)
    kx, kp = jax.random.split(key)
    x = jax.random.normal(kx, (batch, seq, embed_size), dtype=jnp.float32)
    w1, b1, w2, b2 = init_params(kp, embed_size, forward_expansion)

    out = feed_forward(x, w1, b1, w2, b2)
    out = jax.block_until_ready(out)

    # Reference with matching precision (bf16 operands, f32 accumulation),
    # same math as torch: relu(x @ W1^T + b1) @ W2^T + b2.
    x2d = x.reshape(-1, embed_size)
    h_ref = jnp.maximum(
        jnp.dot(x2d.astype(jnp.bfloat16), w1.astype(jnp.bfloat16),
                preferred_element_type=jnp.float32) + b1, 0.0)
    ref = (jnp.dot(h_ref.astype(jnp.bfloat16), w2.astype(jnp.bfloat16),
                   preferred_element_type=jnp.float32) + b2).reshape(x.shape)

    assert out.shape == x.shape
    assert out.dtype == x.dtype
    assert jnp.allclose(out, ref, atol=2e-2, rtol=2e-2), float(
        jnp.max(jnp.abs(out - ref)))

    print("KERNEL_OK")
</pallas_src>

<mosaic_0001>
module attributes {stable_mosaic.version = 11 : i64} {
  func.func @_ffn_kernel(%arg0: i32, %arg1: i32, %arg2: memref<16x128xbf16, #tpu.memory_space<vmem>>, %arg3: memref<128x128xbf16, #tpu.memory_space<vmem>>, %arg4: memref<1x128xf32, #tpu.memory_space<vmem>>, %arg5: memref<128x128xbf16, #tpu.memory_space<vmem>>, %arg6: memref<1x128xf32, #tpu.memory_space<vmem>>, %arg7: memref<16x128xf32, #tpu.memory_space<vmem>>, %arg8: memref<16x128xf32, #tpu.memory_space<vmem>>) attributes {dimension_semantics = [#tpu.dimension_semantics<parallel>, #tpu.dimension_semantics<arbitrary>], iteration_bounds = array<i64: 1, 1>, scalar_prefetch = 0 : i64, scratch_operands = 1 : i64, tpu.core_type = #tpu.core_type<tc>, window_params = [{transform_indices = @transform_0, window_bounds = array<i64: 16, 128>}, {transform_indices = @transform_1, window_bounds = array<i64: 128, 128>}, {transform_indices = @transform_2, window_bounds = array<i64: 1, 128>}, {transform_indices = @transform_3, window_bounds = array<i64: 128, 128>}, {pipeline_mode = #tpu.pipeline_mode<synchronous>, transform_indices = @transform_4, window_bounds = array<i64: 1, 128>}, {transform_indices = @transform_5, window_bounds = array<i64: 16, 128>}]} {
    %c0 = arith.constant 0 : index
    %c0_0 = arith.constant 0 : index
    %0 = vector.load %arg2[%c0, %c0_0] : memref<16x128xbf16, #tpu.memory_space<vmem>>, vector<16x128xbf16>
    %c0_1 = arith.constant 0 : index
    %c0_2 = arith.constant 0 : index
    %1 = vector.load %arg3[%c0_1, %c0_2] : memref<128x128xbf16, #tpu.memory_space<vmem>>, vector<128x128xbf16>
    %cst = arith.constant dense<0.000000e+00> : vector<16x128xf32>
    %2 = tpu.matmul %0, %1, %cst {dimension_numbers = #tpu.dot_dimension_numbers<[1], [0], [0], [1], [0, 0, 1, 1], [], []>} : vector<16x128xbf16>, vector<128x128xbf16>, vector<16x128xf32> -> vector<16x128xf32>
    %c0_3 = arith.constant 0 : index
    %c0_4 = arith.constant 0 : index
    %3 = vector.load %arg4[%c0_3, %c0_4] : memref<1x128xf32, #tpu.memory_space<vmem>>, vector<1x128xf32>
    %4 = vector.broadcast %3 : vector<1x128xf32> to vector<16x128xf32>
    %5 = arith.addf %2, %4 : vector<16x128xf32>
    %cst_5 = arith.constant 0.000000e+00 : f32
    %6 = vector.broadcast %cst_5 : f32 to vector<16x128xf32>
    %7 = arith.maximumf %5, %6 : vector<16x128xf32>
    %8 = arith.truncf %7 : vector<16x128xf32> to vector<16x128xbf16>
    %c0_6 = arith.constant 0 : index
    %c0_7 = arith.constant 0 : index
    %9 = vector.load %arg5[%c0_6, %c0_7] : memref<128x128xbf16, #tpu.memory_space<vmem>>, vector<128x128xbf16>
    %cst_8 = arith.constant dense<0.000000e+00> : vector<16x128xf32>
    %10 = tpu.matmul %8, %9, %cst_8 {dimension_numbers = #tpu.dot_dimension_numbers<[1], [0], [0], [1], [0, 0, 1, 1], [], []>} : vector<16x128xbf16>, vector<128x128xbf16>, vector<16x128xf32> -> vector<16x128xf32>
    %c0_i32 = arith.constant 0 : i32
    %11 = arith.cmpi eq, %arg1, %c0_i32 : i32
    %12 = arith.extui %11 : i1 to i32
    %c0_i32_9 = arith.constant 0 : i32
    %13 = arith.cmpi ne, %12, %c0_i32_9 : i32
    scf.if %13 {
      %c0_14 = arith.constant 0 : index
      %c0_15 = arith.constant 0 : index
      %20 = vector.load %arg8[%c0_14, %c0_15] : memref<16x128xf32, #tpu.memory_space<vmem>>, vector<16x128xf32>
      tpu.vector_store %arg8[%c0_14, %c0_15], %10 {strides = array<i32>} : memref<16x128xf32, #tpu.memory_space<vmem>>, vector<16x128xf32>,
    } else {
    }
    %c0_i32_10 = arith.constant 0 : i32
    %14 = arith.cmpi ne, %arg1, %c0_i32_10 : i32
    %15 = arith.extui %14 : i1 to i32
    %c0_i32_11 = arith.constant 0 : i32
    %16 = arith.cmpi ne, %15, %c0_i32_11 : i32
    scf.if %16 {
      %c0_14 = arith.constant 0 : index
      %c0_15 = arith.constant 0 : index
      %20 = vector.load %arg8[%c0_14, %c0_15] : memref<16x128xf32, #tpu.memory_space<vmem>>, vector<16x128xf32>
      %21 = arith.addf %20, %10 : vector<16x128xf32>
      %c0_16 = arith.constant 0 : index
      %c0_17 = arith.constant 0 : index
      %22 = vector.load %arg8[%c0_16, %c0_17] : memref<16x128xf32, #tpu.memory_space<vmem>>, vector<16x128xf32>
      tpu.vector_store %arg8[%c0_16, %c0_17], %21 {strides = array<i32>} : memref<16x128xf32, #tpu.memory_space<vmem>>, vector<16x128xf32>,
    } else {
    }
    %c0_i32_12 = arith.constant 0 : i32
    %17 = arith.cmpi eq, %arg1, %c0_i32_12 : i32
    %18 = arith.extui %17 : i1 to i32
    %c0_i32_13 = arith.constant 0 : i32
    %19 = arith.cmpi ne, %18, %c0_i32_13 : i32
    scf.if %19 {
      %c0_14 = arith.constant 0 : index
      %c0_15 = arith.constant 0 : index
      %20 = vector.load %arg8[%c0_14, %c0_15] : memref<16x128xf32, #tpu.memory_space<vmem>>, vector<16x128xf32>
      %c0_16 = arith.constant 0 : index
      %c0_17 = arith.constant 0 : index
      %21 = vector.load %arg6[%c0_16, %c0_17] : memref<1x128xf32, #tpu.memory_space<vmem>>, vector<1x128xf32>
      %22 = vector.broadcast %21 : vector<1x128xf32> to vector<16x128xf32>
      %23 = arith.addf %20, %22 : vector<16x128xf32>
      %c0_18 = arith.constant 0 : index
      %c0_19 = arith.constant 0 : index
      %24 = vector.load %arg7[%c0_18, %c0_19] : memref<16x128xf32, #tpu.memory_space<vmem>>, vector<16x128xf32>
      tpu.vector_store %arg7[%c0_18, %c0_19], %23 {strides = array<i32>} : memref<16x128xf32, #tpu.memory_space<vmem>>, vector<16x128xf32>,
    } else {
    }
    return
  }
  func.func @transform_0(%arg0: i32, %arg1: i32) -> (i32, i32) {
    %c0_i32 = arith.constant 0 : i32
    %c0_i32_0 = arith.constant 0 : i32
    return %arg0, %c0_i32 : i32, i32
  }
  func.func @transform_1(%arg0: i32, %arg1: i32) -> (i32, i32) {
    %c0_i32 = arith.constant 0 : i32
    %c0_i32_0 = arith.constant 0 : i32
    return %c0_i32, %arg1 : i32, i32
  }
  func.func @transform_2(%arg0: i32, %arg1: i32) -> (i32, i32) {
    %c0_i32 = arith.constant 0 : i32
    %c0_i32_0 = arith.constant 0 : i32
    return %c0_i32, %arg1 : i32, i32
  }
  func.func @transform_3(%arg0: i32, %arg1: i32) -> (i32, i32) {
    %c0_i32 = arith.constant 0 : i32
    %c0_i32_0 = arith.constant 0 : i32
    return %arg1, %c0_i32 : i32, i32
  }
  func.func @transform_4(%arg0: i32, %arg1: i32) -> (i32, i32) {
    %c0_i32 = arith.constant 0 : i32
    %c0_i32_0 = arith.constant 0 : i32
    %c0_i32_1 = arith.constant 0 : i32
    return %c0_i32, %c0_i32_0 : i32, i32
  }
  func.func @transform_5(%arg0: i32, %arg1: i32) -> (i32, i32) {
    %c0_i32 = arith.constant 0 : i32
    %c0_i32_0 = arith.constant 0 : i32
    return %arg0, %c0_i32 : i32, i32
  }
}

</mosaic_0001>

<bundles_post_ra>
// kernel: feed_forward.1
= control target key start
LH: loop header
LB: loop body
LE: loop exit
PB: predicated region body
PF: predicated region fallthrough
CT: control target
= control target key end

     0   :  { %v381_v0 = vmov 0.0   ;;  %vm382_vm0 = vmmov 0   ;;  %s476_s1 = inlined_call_operand.vmem [shape: bf16[128,128], index: 1, kind: input, shape index: {}]   ;;  %s477_s3 = inlined_call_operand.vmem [shape: bf16[128,128], index: 3, kind: input, shape index: {}]   ;;  %s478_s0 = inlined_call_operand.vmem [shape: bf16[16,128], index: 0, kind: input, shape index: {}]   ;;  %s479_s2 = inlined_call_operand.vmem [shape: f32[1,128], index: 2, kind: input, shape index: {}]   ;;  %s480_s4 = inlined_call_operand.vmem [shape: f32[1,128], index: 4, kind: input, shape index: {}]   ;;  %s481_s5 = inlined_call_operand.vmem [shape: f32[16,128], index: 5, kind: output, shape index: {}]  }
   0x1   :  { %322 = vmatprep.subr.bf16.mxu0 %v381_v0  ;;  %v364_v1 = vld [vmem:[%s476_s1 + $0x38] sm:$0xff]   ;;  %338 = vmatprep.mubr.msk.bf16.mxu0 %vm382_vm0, %v381_v0  ;;  %v365_v2 = vld [vmem:[%s476_s1 + $0x30] sm:$0xff]   ;;  %v366_v3 = vld [vmem:[%s476_s1 + $0x28] sm:$0xff]  }
   0x2   :  { %342 = vmatprep.subr.bf16.mxu1 %v381_v0  ;;  %358 = vmatprep.mubr.msk.bf16.mxu1 %vm382_vm0, %v381_v0  ;;  %v373_v4 = vld [vmem:[%s477_s3 + $0x38] sm:$0xff]   ;;  %v367_v5 = vld [vmem:[%s476_s1 + $0x20] sm:$0xff]   ;;  %v374_v6 = vld [vmem:[%s477_s3 + $0x30] sm:$0xff]  }
   0x3   :  { %323 = vmatpush3.bf16.msra.mxu0 %v364_v1  ;;  %343 = vmatpush3.bf16.msra.mxu1 %v373_v4  ;;  %v368_v7 = vld [vmem:[%s476_s1 + $0x18] sm:$0xff]   ;;  %v375_v8 = vld [vmem:[%s477_s3 + $0x28] sm:$0xff]   ;;  %v369_v9 = vld [vmem:[%s476_s1 + $0x10] sm:$0xff]  }
   0x4   :  { %324 = vmatprep.subr.bf16.mxu0 %v381_v0  ;;  %344 = vmatprep.subr.bf16.mxu1 %v381_v0  ;;  %v376_v10 = vld [vmem:[%s477_s3 + $0x20] sm:$0xff]   ;;  %v370_v11 = vld [vmem:[%s476_s1 + $0x8] sm:$0xff]   ;;  %v377_v12 = vld [vmem:[%s477_s3 + $0x18] sm:$0xff]  }
   0x5   :  { %v371_v13 = vld [vmem:[%s476_s1] sm:$0xff]   ;;  %v378_v15 = vld [vmem:[%s477_s3 + $0x10] sm:$0xff]   ;;  %v379_v16 = vld [vmem:[%s477_s3 + $0x8] sm:$0xff]  }
   0x6   :  { %v372_v14 = vld [vmem:[%s478_s0] sm:$0xff]  }
   0x7   :  { %325 = vmatpush3.bf16.msra.mxu0 %v365_v2  ;;  %345 = vmatpush3.bf16.msra.mxu1 %v374_v6  ;;  %v380_v17 = vld [vmem:[%s477_s3] sm:$0xff]  }
   0x8   :  { %326 = vmatprep.subr.bf16.mxu0 %v381_v0  ;;  %346 = vmatprep.subr.bf16.mxu1 %v381_v0  ;;  %v285_v18 = vld [vmem:[%s479_s2] ss:$0 sm:$0xff] }
   0x9   :  { %v303_v28 = vld [vmem:[%s480_s4] ss:$0 sm:$0xff] }
   0xb   :  { %327 = vmatpush3.bf16.msra.mxu0 %v366_v3  ;;  %347 = vmatpush3.bf16.msra.mxu1 %v375_v8 }
   0xc   :  { %328 = vmatprep.subr.bf16.mxu0 %v381_v0  ;;  %348 = vmatprep.subr.bf16.mxu1 %v381_v0 }
   0xf   :  { %329 = vmatpush3.bf16.msra.mxu0 %v367_v5  ;;  %349 = vmatpush3.bf16.msra.mxu1 %v376_v10 }
  0x10   :  { %330 = vmatprep.subr.bf16.mxu0 %v381_v0  ;;  %350 = vmatprep.subr.bf16.mxu1 %v381_v0 }
  0x13   :  { %331 = vmatpush3.bf16.msra.mxu0 %v368_v7  ;;  %351 = vmatpush3.bf16.msra.mxu1 %v377_v12 }
  0x14   :  { %332 = vmatprep.subr.bf16.mxu0 %v381_v0  ;;  %352 = vmatprep.subr.bf16.mxu1 %v381_v0 }
  0x17   :  { %333 = vmatpush3.bf16.msra.mxu0 %v369_v9  ;;  %353 = vmatpush3.bf16.msra.mxu1 %v378_v15 }
  0x18   :  { %334 = vmatprep.subr.bf16.mxu0 %v381_v0  ;;  %354 = vmatprep.subr.bf16.mxu1 %v381_v0 }
  0x1b   :  { %335 = vmatpush3.bf16.msra.mxu0 %v370_v11  ;;  %355 = vmatpush3.bf16.msra.mxu1 %v379_v16 }
  0x1c   :  { %336 = vmatprep.subr.bf16.mxu0 %v381_v0  ;;  %356 = vmatprep.subr.bf16.mxu1 %v381_v0 }
  0x1f   :  { %337 = vmatpush3.bf16.msra.mxu0 %v371_v13  ;;  %357 = vmatpush3.bf16.msra.mxu1 %v380_v17 }
  0x22   :  { %339 = vmatmul.mubr.bf16.vlgmr.msra.gmra.mxu0 %v372_v14 }
  0xe2   :  { %v134_v19 = vpop.f32.mrf.mxu0 }
  0xe3   :  { %v135_v21 = vadd.f32 %v285_v18, %v134_v19 }
  0xe4   :  { %v340_v20 = vpop.f32.mrf.mxu0 }
  0xe5   :  { %v141_v25 = vmax.f32 %v135_v21, 0.0 }
  0xe6   :  { %v137_v22 = vpop.f32.mrf.mxu0 }
  0xe7   :  { %v138_v23 = vadd.f32 %v285_v18, %v137_v22 }
  0xe8   :  { %v341_v24 = vpop.f32.mrf.mxu0 }
  0xe9   :  { %v142_v26 = vmax.f32 %v138_v23, 0.0 }
  0xeb   :  { %v143_v27 = vpack.c.bf16 %v142_v26, %v141_v25 }
  0xed   :  { %359 = vmatmul.mubr.bf16.vlgmr.msra.gmra.mxu1 %v143_v27 }
 0x1ad   :  { %v242_v29 = vpop.f32.mrf.mxu1 }
 0x1ae   :  { %v277_v30 = vadd.f32 %v303_v28, %v242_v29 }
 0x1af   :  { %v360_v31 = vpop.f32.mrf.mxu1 }
 0x1b0   :  { %279 = vst [vmem:[%s481_s5] sm:$0xff] %v277_v30 }
 0x1b1   :  { %v245_v32 = vpop.f32.mrf.mxu1 }
 0x1b2   :  { %v278_v33 = vadd.f32 %v303_v28, %v245_v32 }
 0x1b3   :  { %v361_v34 = vpop.f32.mrf.mxu1 }
 0x1b4   :  { %280 = vst [vmem:[%s481_s5 + $0x8] sm:$0xff] %v278_v33 }

</bundles_post_ra>
